<compile_context>
chip_gen: v7x
topology: tpu7x:2x2x1
jax: 0.10.0
libtpu: 0.0.40
codegen_flags: <defaults>
</compile_context>

<pallas_src>
import jax
import jax.numpy as jnp
from jax import lax
from jax.experimental import pallas as pl
from jax.experimental.pallas import tpu as pltpu

LN_EPS = 1e-5


def _round_up(x, m):
    return ((x + m - 1) // m) * m


def _linear_layer_kernel(x_ref, gamma_ref, beta_ref, w_ref, b_ref, o_ref, xn_ref):
    # x_ref:     (tm, D)   tile of flattened rows
    # gamma_ref: (1, D)    LayerNorm scale (resident)
    # beta_ref:  (1, D)    LayerNorm shift (resident)
    # w_ref:     (D, tn)   Linear weight tile (native dtype, no f32 up-cast)
    # b_ref:     (1, tn)   Linear bias tile
    # o_ref:     (tm, tn)  output tile
    # xn_ref:    (tm, D)   VMEM scratch caching the LayerNorm result across the j sweep.

    # --- LayerNorm (f32 math), computed only on the first OUT tile of each row tile ---
    @pl.when(pl.program_id(1) == 0)
    def _():
        x = x_ref[...].astype(jnp.float32)
        mean = jnp.mean(x, axis=-1, keepdims=True)
        centered = x - mean
        var = jnp.mean(centered * centered, axis=-1, keepdims=True)
        xn = centered * lax.rsqrt(var + LN_EPS)
        xn = xn * gamma_ref[...].astype(jnp.float32) + beta_ref[...].astype(jnp.float32)
        xn_ref[...] = xn.astype(xn_ref.dtype)

    # --- (Dropout: identity in eval mode) ---

    # --- Linear: cached LN @ W + b on the MXU, f32 accumulation ---
    y = jnp.dot(xn_ref[...], w_ref[...], preferred_element_type=jnp.float32)
    y = y + b_ref[...].astype(jnp.float32)

    # --- ReLU ---
    o_ref[...] = jnp.maximum(y, 0.0).astype(o_ref.dtype)


def linear_layer_forward(x, gamma, beta, weight_t, bias, *, tm=512, tn=512):
    """x: (N, L, D) -> (N, L, OUT).  weight_t: (D, OUT), bias: (OUT,)."""
    N, L, D = x.shape
    OUT = weight_t.shape[1]
    rows = N * L

    x_dtype = x.dtype
    w_dtype = weight_t.dtype
    bx = jnp.dtype(x_dtype).itemsize
    bw = jnp.dtype(w_dtype).itemsize
    bo = jnp.dtype(x_dtype).itemsize

    # Row-tile sublane packing: 8 for 32-bit, 16 for bf16, 32 for 8-bit dtypes.
    sub = max(8, 32 // bx)

    # --- generation-aware VMEM budget (keep ~25% headroom for Mosaic internals) ---
    try:
        info = pltpu.get_tpu_info()
        vmem_cap = int(getattr(info, "vmem_capacity_bytes", 64 << 20))
    except Exception:  # pragma: no cover - conservative fallback (v7x per-TC size)
        vmem_cap = 64 << 20
    budget = int(vmem_cap * 0.75)

    # --- OUT tiling: lane-dense (multiple of 128); keep the whole weight resident
    #     when it is cheap so it is DMA'd once instead of re-streamed per row tile ---
    out_p128 = _round_up(OUT, 128)
    if 2 * D * out_p128 * bw <= budget // 3:
        tn_eff = out_p128
    else:
        tn_eff = max(128, min(_round_up(tn, 128), out_p128))
    out_p = _round_up(OUT, tn_eff)

    # --- row tile: as large as requested / needed, rounded to sublane packing ---
    tm_eff = max(sub, min(_round_up(tm, sub), _round_up(rows, sub)))

    def footprint(tm_, tn_):
        return (2 * tm_ * D * bx          # x tiles (double-buffered)
                + 2 * D * tn_ * bw        # weight tiles (double-buffered)
                + 2 * tm_ * tn_ * bo      # output tiles (double-buffered)
                + tm_ * D * bw            # cached LayerNorm scratch
                + 2 * (2 * D + tn_) * 4   # gamma / beta / bias
                + (2 << 20))              # slack for Mosaic internal scratch

    # Shrink tn first (not below 256), then tm, then tn down to 128 if still needed.
    while footprint(tm_eff, tn_eff) > budget and tn_eff > 256:
        tn_eff = max(256, _round_up(tn_eff // 2, 128))
        out_p = _round_up(OUT, tn_eff)
    while footprint(tm_eff, tn_eff) > budget and tm_eff > sub:
        tm_eff = max(sub, _round_up(tm_eff // 2, sub))
    while footprint(tm_eff, tn_eff) > budget and tn_eff > 128:
        tn_eff = max(128, _round_up(tn_eff // 2, 128))
        out_p = _round_up(OUT, tn_eff)

    need = footprint(tm_eff, tn_eff)
    vmem_limit = int(max(min(need + (4 << 20), budget), min(need, vmem_cap)))
    vmem_limit = max(vmem_limit, 16 << 20)

    # --- no row padding: partial last row tile is masked by Pallas on store ---
    x2 = x.reshape(rows, D)
    gamma2 = gamma.reshape(1, D)
    beta2 = beta.reshape(1, D)
    w2 = weight_t
    b2 = bias
    if out_p != OUT:
        w2 = jnp.pad(w2, ((0, 0), (0, out_p - OUT)))
        b2 = jnp.pad(b2, ((0, out_p - OUT),))
    bias2 = b2.reshape(1, out_p)

    grid = (pl.cdiv(rows, tm_eff), out_p // tn_eff)

    cost = pl.CostEstimate(
        flops=2 * rows * D * out_p + 8 * rows * D,
        transcendentals=rows,
        bytes_accessed=(rows * D * bx
                        + grid[0] * D * out_p * bw
                        + rows * out_p * bo),
    )

    out2 = pl.pallas_call(
        _linear_layer_kernel,
        out_shape=jax.ShapeDtypeStruct((rows, out_p), x_dtype),
        grid_spec=pltpu.PrefetchScalarGridSpec(
            num_scalar_prefetch=0,
            grid=grid,
            in_specs=[
                pl.BlockSpec((tm_eff, D), lambda i, j: (i, 0)),    # x row tile
                pl.BlockSpec((1, D), lambda i, j: (0, 0)),         # gamma (resident)
                pl.BlockSpec((1, D), lambda i, j: (0, 0)),         # beta  (resident)
                pl.BlockSpec((D, tn_eff), lambda i, j: (0, j)),    # weight tile
                pl.BlockSpec((1, tn_eff), lambda i, j: (0, j)),    # bias tile
            ],
            out_specs=pl.BlockSpec((tm_eff, tn_eff), lambda i, j: (i, j)),
            scratch_shapes=[pltpu.VMEM((tm_eff, D), w_dtype)],     # cached LN
        ),
        compiler_params=pltpu.CompilerParams(
            dimension_semantics=("parallel", "arbitrary"),
            vmem_limit_bytes=vmem_limit),
        cost_estimate=cost,
    )(x2, gamma2, beta2, w2, bias2)

    if out_p != OUT:
        out2 = out2[:, :OUT]
    return out2.reshape(N, L, OUT)


def _reference_forward(x, gamma, beta, weight_t, bias):
    xf = x.astype(jnp.float32)
    mean = jnp.mean(xf, axis=-1, keepdims=True)
    var = jnp.mean((xf - mean) ** 2, axis=-1, keepdims=True)
    xn = (xf - mean) / jnp.sqrt(var + LN_EPS)
    xn = xn * gamma + beta
    y = xn @ weight_t.astype(jnp.float32) + bias.astype(jnp.float32)
    return jnp.maximum(y, 0.0).astype(x.dtype)


if __name__ == "__main__":
    # Small shapes consistent with the module's (N, L, D) forward contract.
    N, L, D, OUT = 2, 8, 32, 64

    key = jax.random.PRNGKey(0)
    kx, kg, kb, kw, kbias = jax.random.split(key, 5)

    x = jax.random.normal(kx, (N, L, D), dtype=jnp.float32)

    # Deterministic parameter init (synthetic; shapes match nn.LayerNorm(D) and
    # nn.Linear(D, OUT)).
    gamma = 1.0 + 0.1 * jax.random.normal(kg, (D,), dtype=jnp.float32)
    beta = 0.1 * jax.random.normal(kb, (D,), dtype=jnp.float32)
    # PyTorch Linear weight is (OUT, D); store the transpose (D, OUT) for x @ W.
    weight_t = (jax.random.normal(kw, (D, OUT), dtype=jnp.float32)
                * (1.0 / jnp.sqrt(D)))
    bias = 0.05 * jax.random.normal(kbias, (OUT,), dtype=jnp.float32)

    out = linear_layer_forward(x, gamma, beta, weight_t, bias)
    out = jax.block_until_ready(out)

    ref = _reference_forward(x, gamma, beta, weight_t, bias)
    assert out.shape == (N, L, OUT)
    assert jnp.allclose(out, ref, atol=1e-4, rtol=1e-4), "mismatch vs reference"

    print("KERNEL_OK")
</pallas_src>

<mosaic_0001>
module attributes {stable_mosaic.version = 11 : i64} {
  func.func @_linear_layer_kernel(%arg0: i32, %arg1: i32, %arg2: memref<16x32xf32, #tpu.memory_space<vmem>>, %arg3: memref<1x32xf32, #tpu.memory_space<vmem>>, %arg4: memref<1x32xf32, #tpu.memory_space<vmem>>, %arg5: memref<32x128xf32, #tpu.memory_space<vmem>>, %arg6: memref<1x128xf32, #tpu.memory_space<vmem>>, %arg7: memref<16x128xf32, #tpu.memory_space<vmem>>, %arg8: memref<16x32xf32, #tpu.memory_space<vmem>>) attributes {dimension_semantics = [#tpu.dimension_semantics<parallel>, #tpu.dimension_semantics<arbitrary>], iteration_bounds = array<i64: 1, 1>, scalar_prefetch = 0 : i64, scratch_operands = 1 : i64, tpu.core_type = #tpu.core_type<tc>, window_params = [{transform_indices = @transform_0, window_bounds = array<i64: 16, 32>}, {pipeline_mode = #tpu.pipeline_mode<synchronous>, transform_indices = @transform_1, window_bounds = array<i64: 1, 32>}, {pipeline_mode = #tpu.pipeline_mode<synchronous>, transform_indices = @transform_2, window_bounds = array<i64: 1, 32>}, {transform_indices = @transform_3, window_bounds = array<i64: 32, 128>}, {transform_indices = @transform_4, window_bounds = array<i64: 1, 128>}, {transform_indices = @transform_5, window_bounds = array<i64: 16, 128>}]} {
    %c0_i32 = arith.constant 0 : i32
    %0 = arith.cmpi eq, %arg1, %c0_i32 : i32
    %1 = arith.extui %0 : i1 to i32
    %c0_i32_0 = arith.constant 0 : i32
    %2 = arith.cmpi ne, %1, %c0_i32_0 : i32
    scf.if %2 {
      %c0_9 = arith.constant 0 : index
      %c0_10 = arith.constant 0 : index
      %12 = vector.load %arg2[%c0_9, %c0_10] : memref<16x32xf32, #tpu.memory_space<vmem>>, vector<16x32xf32>
      %cst_11 = arith.constant dense<0.000000e+00> : vector<16xf32>
      %13 = vector.multi_reduction <add>, %12, %cst_11 [1] : vector<16x32xf32> to vector<16xf32>
      %14 = vector.shape_cast %13 : vector<16xf32> to vector<16x1xf32>
      %cst_12 = arith.constant 3.200000e+01 : f32
      %15 = vector.broadcast %cst_12 : f32 to vector<16x1xf32>
      %16 = arith.divf %14, %15 : vector<16x1xf32>
      %17 = vector.broadcast %16 : vector<16x1xf32> to vector<16x32xf32>
      %18 = arith.subf %12, %17 : vector<16x32xf32>
      %19 = arith.mulf %18, %18 : vector<16x32xf32>
      %cst_13 = arith.constant dense<0.000000e+00> : vector<16xf32>
      %20 = vector.multi_reduction <add>, %19, %cst_13 [1] : vector<16x32xf32> to vector<16xf32>
      %21 = vector.shape_cast %20 : vector<16xf32> to vector<16x1xf32>
      %cst_14 = arith.constant 3.200000e+01 : f32
      %22 = vector.broadcast %cst_14 : f32 to vector<16x1xf32>
      %23 = arith.divf %21, %22 : vector<16x1xf32>
      %cst_15 = arith.constant 9.99999974E-6 : f32
      %24 = vector.broadcast %cst_15 : f32 to vector<16x1xf32>
      %25 = arith.addf %23, %24 : vector<16x1xf32>
      %26 = math.rsqrt %25 : vector<16x1xf32>
      %27 = vector.broadcast %26 : vector<16x1xf32> to vector<16x32xf32>
      %28 = arith.mulf %18, %27 : vector<16x32xf32>
      %c0_16 = arith.constant 0 : index
      %c0_17 = arith.constant 0 : index
      %29 = vector.load %arg3[%c0_16, %c0_17] : memref<1x32xf32, #tpu.memory_space<vmem>>, vector<1x32xf32>
      %30 = vector.broadcast %29 : vector<1x32xf32> to vector<16x32xf32>
      %31 = arith.mulf %28, %30 : vector<16x32xf32>
      %c0_18 = arith.constant 0 : index
      %c0_19 = arith.constant 0 : index
      %32 = vector.load %arg4[%c0_18, %c0_19] : memref<1x32xf32, #tpu.memory_space<vmem>>, vector<1x32xf32>
      %33 = vector.broadcast %32 : vector<1x32xf32> to vector<16x32xf32>
      %34 = arith.addf %31, %33 : vector<16x32xf32>
      %c0_20 = arith.constant 0 : index
      %c0_21 = arith.constant 0 : index
      %35 = vector.load %arg8[%c0_20, %c0_21] : memref<16x32xf32, #tpu.memory_space<vmem>>, vector<16x32xf32>
      tpu.vector_store %arg8[%c0_20, %c0_21], %34 {strides = array<i32>} : memref<16x32xf32, #tpu.memory_space<vmem>>, vector<16x32xf32>,
    } else {
    }
    %c0 = arith.constant 0 : index
    %c0_1 = arith.constant 0 : index
    %3 = vector.load %arg8[%c0, %c0_1] : memref<16x32xf32, #tpu.memory_space<vmem>>, vector<16x32xf32>
    %c0_2 = arith.constant 0 : index
    %c0_3 = arith.constant 0 : index
    %4 = vector.load %arg5[%c0_2, %c0_3] : memref<32x128xf32, #tpu.memory_space<vmem>>, vector<32x128xf32>
    %cst = arith.constant dense<0.000000e+00> : vector<16x128xf32>
    %5 = tpu.matmul %3, %4, %cst {dimension_numbers = #tpu.dot_dimension_numbers<[1], [0], [0], [1], [0, 0, 1, 1], [], []>} : vector<16x32xf32>, vector<32x128xf32>, vector<16x128xf32> -> vector<16x128xf32>
    %c0_4 = arith.constant 0 : index
    %c0_5 = arith.constant 0 : index
    %6 = vector.load %arg6[%c0_4, %c0_5] : memref<1x128xf32, #tpu.memory_space<vmem>>, vector<1x128xf32>
    %7 = vector.broadcast %6 : vector<1x128xf32> to vector<16x128xf32>
    %8 = arith.addf %5, %7 : vector<16x128xf32>
    %cst_6 = arith.constant 0.000000e+00 : f32
    %9 = vector.broadcast %cst_6 : f32 to vector<16x128xf32>
    %10 = arith.maximumf %8, %9 : vector<16x128xf32>
    %c0_7 = arith.constant 0 : index
    %c0_8 = arith.constant 0 : index
    %11 = vector.load %arg7[%c0_7, %c0_8] : memref<16x128xf32, #tpu.memory_space<vmem>>, vector<16x128xf32>
    tpu.vector_store %arg7[%c0_7, %c0_8], %10 {strides = array<i32>} : memref<16x128xf32, #tpu.memory_space<vmem>>, vector<16x128xf32>,
    return
  }
  func.func @transform_0(%arg0: i32, %arg1: i32) -> (i32, i32) {
    %c0_i32 = arith.constant 0 : i32
    %c0_i32_0 = arith.constant 0 : i32
    return %arg0, %c0_i32 : i32, i32
  }
  func.func @transform_1(%arg0: i32, %arg1: i32) -> (i32, i32) {
    %c0_i32 = arith.constant 0 : i32
    %c0_i32_0 = arith.constant 0 : i32
    %c0_i32_1 = arith.constant 0 : i32
    return %c0_i32, %c0_i32_0 : i32, i32
  }
  func.func @transform_2(%arg0: i32, %arg1: i32) -> (i32, i32) {
    %c0_i32 = arith.constant 0 : i32
    %c0_i32_0 = arith.constant 0 : i32
    %c0_i32_1 = arith.constant 0 : i32
    return %c0_i32, %c0_i32_0 : i32, i32
  }
  func.func @transform_3(%arg0: i32, %arg1: i32) -> (i32, i32) {
    %c0_i32 = arith.constant 0 : i32
    %c0_i32_0 = arith.constant 0 : i32
    return %c0_i32, %arg1 : i32, i32
  }
  func.func @transform_4(%arg0: i32, %arg1: i32) -> (i32, i32) {
    %c0_i32 = arith.constant 0 : i32
    %c0_i32_0 = arith.constant 0 : i32
    return %c0_i32, %arg1 : i32, i32
  }
  func.func @transform_5(%arg0: i32, %arg1: i32) -> (i32, i32) {
    %c0_i32 = arith.constant 0 : i32
    return %arg0, %arg1 : i32, i32
  }
}

</mosaic_0001>

<bundles_post_ra>
// kernel: tpu_custom_call.1
= control target key start
LH: loop header
LB: loop body
LE: loop exit
PB: predicated region body
PF: predicated region fallthrough
CT: control target
= control target key end

     0   :  { %10 = vsyncpa [#allocation4], 0  ;;  %s428_s0 = inlined_call_operand.hbm [shape: f32[16,32], index: 0, kind: input, shape index: {}]   ;;  %s429_s1 = inlined_call_operand.vmem [shape: f32[1,32], index: 1, kind: input, shape index: {}]   ;;  %s430_s2 = inlined_call_operand.vmem [shape: f32[1,32], index: 2, kind: input, shape index: {}]   ;;  %s431_s3 = inlined_call_operand.hbm [shape: f32[32,128], index: 3, kind: input, shape index: {}]   ;;  %s432_s4 = inlined_call_operand.vmem [shape: f32[1,128], index: 4, kind: input, shape index: {}]   ;;  %s433_s5 = inlined_call_operand.hbm [shape: f32[16,128], index: 5, kind: output, shape index: {}]  }
   0x1   :  { %11 = vsyncpa [#allocation7], 0 }
   0x2   :  { %12 = vsyncpa [#allocation5], 0  ;;  %s331_s18 = smov [#allocation3]   ;;  %s259_s22 = scalar_lea.hbm %s428_s0, 256 }
   0x3   :  { %s18_s19 = sshll.u32 %s331_s18, 4  ;;  %p260_p0 = scmp.ne.s32.totalorder %s428_s0, %s259_s22  ;;  %s19_s19 = int_to_ptr.vmem [resolvable:$true] %s18_s19 }
   0x4   :  { %p263_p1 = scmp.lt.u32.totalorder %s259_s22, %s428_s0 }
   0x6   :  { %p265_p2 = pnand %p263_p1, %p260_p0 }
   0x8   :  { %268 = shalt.err (!%p265_p2)
}
   0x9   :  { %s269_s27 = scalar_lea.vmem %s19_s19, 256  ;;  %p274_p4 = scmp.lt.s32.totalorder %s19_s19, %s19_s19 }
   0xa   :  { %p270_p3 = scmp.ne.s32.totalorder %s19_s19, %s269_s27  ;;  %p275_p5 = scmp.lt.s32.totalorder %s269_s27, %s269_s27 }
   0xc   :  { %p276_p6 = por %p275_p5, %p274_p4 }
   0xe   :  { %p277_p7 = pnand %p276_p6, %p270_p3 }
  0x10   :  { %280 = shalt.err (!%p277_p7)
}
  0x11   :  { %s332_s28 = smov 128   ;;  %s333_s29 = smov 8  }
  0x12   :  { %24 = dma.hbm_to_vmem [thread:$0]  %s428_s0, 256, %s19_s19, [#allocation4], %s332_s28, %s332_s28, %s333_s29  }
  0x13   :  { %s334_s7 = smov [#allocation6]   ;;  %s281_s11 = scalar_lea.hbm %s431_s3, 512 }
  0x14   :  { %s34_s8 = sshll.u32 %s334_s7, 4  ;;  %p282_p8 = scmp.ne.s32.totalorder %s431_s3, %s281_s11  ;;  %s35_s8 = int_to_ptr.vmem [resolvable:$true] %s34_s8 }
  0x15   :  { %p285_p9 = scmp.lt.u32.totalorder %s281_s11, %s431_s3 }
  0x17   :  { %p287_p10 = pnand %p285_p9, %p282_p8 }
  0x19   :  { %290 = shalt.err (!%p287_p10)
}
  0x1a   :  { %s291_s16 = scalar_lea.vmem %s35_s8, 512  ;;  %p296_p12 = scmp.lt.s32.totalorder %s35_s8, %s35_s8 }
  0x1b   :  { %p292_p11 = scmp.ne.s32.totalorder %s35_s8, %s291_s16  ;;  %p297_p13 = scmp.lt.s32.totalorder %s291_s16, %s291_s16 }
  0x1d   :  { %p298_p0 = por %p297_p13, %p296_p12 }
  0x1f   :  { %p299_p1 = pnand %p298_p0, %p292_p11 }
  0x21   :  { %302 = shalt.err (!%p299_p1)
}
  0x22   :  { %40 = dma.hbm_to_vmem [thread:$0]  %s431_s3, 512, %s35_s8, [#allocation7], %s332_s28, %s332_s28, %s333_s29  }
  0x23   :  { %325 = dma.done.wait [#allocation4], 256  }
  0x24   :  { %326 = vsyncadd [#allocation4], 4294967040 }
  0x25   :  { %327 = dma.done.wait [#allocation7], 512  }
  0x26   :  { %328 = vsyncadd [#allocation7], 4294966784  ;;  %vm55_vm0 = vcmask 261120   ;;  %v53_v0 = vld [vmem:[#allocation3] sm:$0xff]  ;;  %v54_v1 = vld [vmem:[#allocation3 + $0x8] sm:$0xff] }
  0x27   :  { %v56_v2 = vsel %vm55_vm0, %v53_v0, 0.0  ;;  %v59_v3 = vsel %vm55_vm0, %v54_v1, 0.0  ;;  %v105_v14 = vld [vmem:[#allocation6] sm:$0xff]  ;;  %v106_v15 = vld [vmem:[#allocation6 + $0x8] sm:$0xff]  ;;  %v107_v17 = vld [vmem:[#allocation6 + $0x10] sm:$0xff] }
  0x28   :  { %57 = vadd.xlane.f32.xlu0 %v56_v2  ;;  %v242_v16 = vpack.c.bf16 %v106_v15, %v105_v14  ;;  %v108_v18 = vld [vmem:[#allocation6 + $0x18] sm:$0xff]  ;;  %v220_v27 = vld [vmem:[%s429_s1] ss:$0 sm:$0xff] }
  0x29   :  { %v246_v19 = vpack.c.bf16 %v108_v18, %v107_v17  ;;  %v221_v29 = vld [vmem:[%s430_s2] ss:$0 sm:$0xff]  ;;  %s335_s2 = smov [#allocation8]  }
  0x2a   :  { %243 = vmatprep.subr.bf16.mxu0 %v242_v16  ;;  %v222_v38 = vld [vmem:[%s432_s4] ss:$0 sm:$0xff]  ;;  %s207_s22 = sshll.u32 %s335_s2, 4  ;;  %s208_s22 = int_to_ptr.vmem [resolvable:$true] %s207_s22 }
  0x2b   :  { %245 = vmatpush3.bf16.msra.mxu0 %v242_v16  ;;  %s303_s23 = scalar_lea.vmem %s208_s22, 256  ;;  %p308_p3 = scmp.lt.s32.totalorder %s208_s22, %s208_s22 }
  0x2c   :  { %60 = vadd.xlane.f32.xlu0 %v59_v3  ;;  %247 = vmatprep.subr.bf16.mxu0 %v246_v19  ;;  %p304_p2 = scmp.ne.s32.totalorder %s208_s22, %s303_s23  ;;  %p309_p4 = scmp.lt.s32.totalorder %s303_s23, %s303_s23 }
  0x2e   :  { %p310_p5 = por %p309_p4, %p308_p3 }
  0x2f   :  { %249 = vmatpush3.bf16.msra.mxu0 %v246_v19 }
  0x30   :  { %p311_p6 = pnand %p310_p5, %p304_p2 }
  0xb5   :  { %v58_v4 = vpop.xlane.xlu0 %57 }
  0xb6   :  { %v63_v5 = vmul.f32 0.03125, %v58_v4 }
  0xb8   :  { %v65_v6 = vsub.f32 %v53_v0, %v63_v5 }
  0xb9   :  { %v61_v7 = vpop.xlane.xlu0 %60 }
  0xba   :  { %v64_v8 = vmul.f32 0.03125, %v61_v7  ;;  %v67_v9 = vmul.f32 %v65_v6, %v65_v6 }
  0xbc   :  { %v66_v10 = vsub.f32 %v54_v1, %v64_v8  ;;  %v69_v11 = vsel %vm55_vm0, %v67_v9, 0.0 }
  0xbd   :  { %70 = vadd.xlane.f32.xlu1 %v69_v11 }
  0xbe   :  { %v68_v12 = vmul.f32 %v66_v10, %v66_v10 }
  0xc0   :  { %v72_v13 = vsel %vm55_vm0, %v68_v12, 0.0 }
  0xc1   :  { %73 = vadd.xlane.f32.xlu1 %v72_v13 }
 0x14a   :  { %v71_v20 = vpop.xlane.xlu1 %70 }
 0x14b   :  { %v75_v21 = vmul.f32 0.03125, %v71_v20 }
 0x14d   :  { %v77_v22 = vadd.f32 1e-05, %v75_v21 }
 0x14e   :  { %v74_v23 = vpop.xlane.xlu1 %73 }
 0x14f   :  { %255 = vrsqrt.f32 %v77_v22  ;;  %v76_v24 = vmul.f32 0.03125, %v74_v23 }
 0x151   :  { %v78_v25 = vadd.f32 1e-05, %v76_v24 }
 0x153   :  { %257 = vrsqrt.f32 %v78_v25 }
 0x159   :  { %v256_v26 = vpop.eup %255 }
 0x15a   :  { %v81_v28 = vmul.f32 %v256_v26, %v65_v6 }
 0x15c   :  { %v90_v30 = vmul.f32 %v220_v27, %v81_v28 }
 0x15d   :  { %v258_v31 = vpop.eup %257 }
 0x15e   :  { %v99_v32 = vadd.f32 %v221_v29, %v90_v30  ;;  %v82_v33 = vmul.f32 %v258_v31, %v66_v10 }
 0x160   :  { %101 = vst.msk [vmem:[#allocation2] sm:$0xff] %vm55_vm0, %v99_v32  ;;  %v91_v34 = vmul.f32 %v220_v27, %v82_v33 }
 0x162   :  { %v100_v35 = vadd.f32 %v221_v29, %v91_v34 }
 0x164   :  { %102 = vst.msk [vmem:[#allocation2 + $0x8] sm:$0xff] %vm55_vm0, %v100_v35 }
 0x167   :  { %v103_v36 = vld [vmem:[#allocation2] sm:$0xff] }
 0x168   :  { %239 = vmatprep.mubr.msk.f32.mxu0 %vm55_vm0, %v103_v36 }
 0x16b   :  { %v104_v37 = vld [vmem:[#allocation2 + $0x8] sm:$0xff] }
 0x16c   :  { %240 = vmatmul.mubr.msk.f32.vlgmr.msra.gmra.mrb[0].mxu0 %vm55_vm0, %v104_v37 }
 0x23f   :  { %v241_v39 = vpop.f32.mrb[0].mxu0 }
 0x240   :  { %v195_v40 = vadd.f32 %v241_v39, %v222_v38  ;;  %v189_v41 = vpop.f32.mrb[1].mxu0 }
 0x241   :  { %v190_v42 = vadd.f32 %v222_v38, %v189_v41 }
 0x242   :  { %v199_v43 = vmax.f32 %v195_v40, 0.0 }
 0x243   :  { %v198_v44 = vmax.f32 %v190_v42, 0.0 }
 0x244   :  { %201 = vst [vmem:[#allocation8 + $0x8] sm:$0xff] %v199_v43 }
 0x245   :  { %200 = vst [vmem:[#allocation8] sm:$0xff] %v198_v44 }
 0x246   :  { %314 = shalt.err (!%p311_p6)
}
 0x247   :  { %s315_s25 = scalar_lea.hbm %s433_s5, 256 }
 0x248   :  { %p316_p7 = scmp.ne.s32.totalorder %s433_s5, %s315_s25  ;;  %p319_p8 = scmp.lt.u32.totalorder %s315_s25, %s433_s5 }
 0x24a   :  { %p321_p9 = pnand %p319_p8, %p316_p7 }
 0x24c   :  { %324 = shalt.err (!%p321_p9)
}
 0x24d   :  { %213 = dma.vmem_to_hbm [thread:$0]  %s208_s22, 256, %s433_s5, [#allocation5], %s332_s28, %s332_s28, %s333_s29  }
 0x24e   :  { %329 = dma.done.wait [#allocation5], 256  }
 0x24f   :  { %330 = vsyncadd [#allocation5], 4294967040 }
 0x250   :  { %217 = vsyncpa [#allocation4], 1 }
 0x251   :  { %218 = vsyncpa [#allocation7], 1 }
 0x252   :  { %219 = vsyncpa [#allocation5], 1 }

</bundles_post_ra>
